<compile_context>
chip_gen: v7x
topology: tpu7x:2x2x1
jax: 0.10.0
libtpu: 0.0.40
codegen_flags: <defaults>
</compile_context>

<pallas_src>
import functools
import math

import jax
import jax.numpy as jnp
from jax import lax
from jax.experimental import pallas as pl
from jax.experimental.pallas import tpu as pltpu


def _round_up(x, m):
    return (x + m - 1) // m * m


def _cdiv(a, b):
    return -(-a // b)


@functools.partial(jax.jit, static_argnames=("compute_dtype",))
def downsampling_forward(x_nchw, weight, bias, *, compute_dtype=jnp.float32):
    """Conv2d(C, C, kernel=3, stride=2, padding=1) followed by ReLU.

    x_nchw: (N, C, H, W) float32
    weight: (C, C, 3, 3)  (PyTorch OIHW layout)
    bias:   (C,)
    compute_dtype: dtype of the MXU operands.  bfloat16 is recommended on all
        TPU generations (v5e included): the MXU is bf16-native everywhere and
        the bias+ReLU epilogue stays f32, so it halves activation DMA bytes on
        a memory-bound op.  float32 matches the reference to tight tolerance.
    returns (N, C, OH, OW), float32.
    """
    N, C, H, W = x_nchw.shape
    KH = KW = 3
    OH = (H - 1) // 2 + 1
    OW = (W - 1) // 2 + 1
    OWp = OW + 1            # flat row pitch; the spare column absorbs the kw=2 wrap
    cbytes = jnp.dtype(compute_dtype).itemsize

    # ---- per-generation VMEM budget -> output-row tile size TOH. ----
    def _lane(v):
        return _round_up(max(int(v), 1), 128)

    def _sub(v, itemsize):
        return _round_up(max(int(v), 1), 16 if itemsize == 2 else 8)

    def _footprint(toh):
        lt, mt = (toh + 2) * OWp, toh * OWp
        slab = _sub(4 * C, cbytes) * _lane(lt) * cbytes        # one slab block
        strip = _sub(9 * C, cbytes) * _lane(mt) * cbytes       # im2col scratch
        outb = _sub(C, 4) * _lane(mt) * 4                      # one output block
        wb = _sub(C, cbytes) * _lane(9 * C) * cbytes + _sub(C, 4) * _lane(1) * 4
        return 2 * slab + strip + 2 * outb + 3 * outb + wb     # 2x = double buffering

    try:
        hw_vmem = int(pltpu.get_tpu_info().vmem_capacity_bytes)
    except Exception:
        hw_vmem = 64 * 1024 * 1024                             # conservative (v7x)
    vmem_cap = int(min(0.75 * hw_vmem, 100 * 1024 * 1024))     # ~48MiB v7x, ~96MiB v5e/v6e
    budget = int(0.8 * vmem_cap)

    TOH = OH
    while TOH > 1 and _footprint(TOH) > budget:
        TOH = _cdiv(TOH, 2)
    R = _cdiv(OH, TOH)
    OHt = R * TOH
    Lt = (TOH + 2) * OWp        # flat slab length per row tile (incl. 2-row halo)
    Mt = TOH * OWp              # flat output length per row tile

    # ---- wrapper glue: channel-major pad + parity phases + row-tile slabs. ----
    Hp = 2 * (OHt + 2)          # both row parities get OHt+2 rows
    Wp = 2 * OWp
    x_pad = jnp.pad(x_nchw.astype(compute_dtype),
                    ((0, 0), (0, 0), (1, Hp - 1 - H), (1, Wp - 1 - W)))
    # Four row/col parity phases stacked along a 4*C "phase-channel" axis.
    phases = jnp.stack([x_pad[:, :, pr::2, pc::2]
                        for pr in (0, 1) for pc in (0, 1)], axis=1)  # (N,4,C,OHt+2,OWp)
    # Row-tile slabs with a 2-row halo, flattened so taps are plain flat slices.
    slabs = jnp.stack([phases[:, :, :, r * TOH:r * TOH + TOH + 2, :]
                       for r in range(R)], axis=1)                   # (N,R,4,C,TOH+2,OWp)
    slabs = slabs.reshape(N, R, 4 * C, Lt)

    # Weights: OIHW -> (C_out, 9*C_in), inner order (kh, kw, ci); bias as f32 column.
    w_flat = jnp.transpose(weight, (0, 2, 3, 1)).reshape(C, 9 * C).astype(compute_dtype)
    b_col = bias.reshape(C, 1).astype(jnp.float32)

    # ---- fused conv kernel: im2col strip in VMEM -> one MXU dot -> bias+ReLU. ----
    def kernel(slab_ref, w_ref, b_ref, out_ref, strip_ref):
        for kh in range(KH):
            for kw in range(KW):
                p = (kh % 2) * 2 + (kw % 2)            # parity phase index
                off = (kh // 2) * OWp + (kw // 2)      # flat shift inside the slab
                t = kh * KW + kw
                strip_ref[t * C:(t + 1) * C, :] = (
                    slab_ref[0, 0, p * C:(p + 1) * C, off:off + Mt])
        y = jnp.dot(w_ref[...], strip_ref[...],
                    preferred_element_type=jnp.float32)              # (C, Mt)
        out_ref[0, 0, :, :] = jnp.maximum(y + b_ref[...], 0.0).astype(out_ref.dtype)

    grid_spec = pltpu.PrefetchScalarGridSpec(
        num_scalar_prefetch=0,
        grid=(N, R),
        in_specs=[
            pl.BlockSpec((1, 1, 4 * C, Lt), lambda n, r: (n, r, 0, 0)),
            pl.BlockSpec((C, 9 * C), lambda n, r: (0, 0)),
            pl.BlockSpec((C, 1), lambda n, r: (0, 0)),
        ],
        out_specs=pl.BlockSpec((1, 1, C, Mt), lambda n, r: (n, r, 0, 0)),
        scratch_shapes=[pltpu.VMEM((9 * C, Mt), compute_dtype)],
    )

    vmem_limit = int(min(vmem_cap,
                         max(32 * 1024 * 1024, 2 * _footprint(TOH) + (4 << 20))))
    flops = 2 * N * R * Mt * (9 * C) * C
    bytes_accessed = (slabs.size * cbytes + w_flat.size * cbytes
                      + C * 4 + N * R * C * Mt * 4)
    cost = pl.CostEstimate(flops=flops, transcendentals=0,
                           bytes_accessed=bytes_accessed)

    out_flat = pl.pallas_call(
        kernel,
        out_shape=jax.ShapeDtypeStruct((N, R, C, Mt), jnp.float32),
        grid_spec=grid_spec,
        compiler_params=pltpu.CompilerParams(
            dimension_semantics=("parallel", "parallel"),
            vmem_limit_bytes=vmem_limit),
        cost_estimate=cost,
    )(slabs, w_flat, b_col)

    # Already channel-major; drop the spare column and any padded rows.
    out = out_flat.reshape(N, R, C, TOH, OWp)
    out = jnp.moveaxis(out, 1, 2).reshape(N, C, OHt, OWp)
    return out[:, :, :OH, :OW]


def _reference(x_nchw, weight, bias):
    y = lax.conv_general_dilated(
        x_nchw, weight,
        window_strides=(2, 2),
        padding=((1, 1), (1, 1)),
        dimension_numbers=("NCHW", "OIHW", "NCHW"))
    return jnp.maximum(y + bias.reshape(1, -1, 1, 1), 0.0)


if __name__ == "__main__":
    key = jax.random.PRNGKey(0)
    k_x, k_w, k_b = jax.random.split(key, 3)

    N, C, H, W = 2, 4, 16, 16
    x = jax.random.normal(k_x, (N, C, H, W), dtype=jnp.float32)

    # Deterministic parameter init (PyTorch-default-style uniform bounds).
    fan_in = C * 3 * 3
    bound = 1.0 / math.sqrt(fan_in)
    weight = jax.random.uniform(k_w, (C, C, 3, 3), dtype=jnp.float32,
                                minval=-bound, maxval=bound)
    bias = jax.random.uniform(k_b, (C,), dtype=jnp.float32,
                              minval=-bound, maxval=bound)

    ref = jax.block_until_ready(_reference(x, weight, bias))

    # f32 path (exact, tight tolerance).
    out = jax.block_until_ready(downsampling_forward(x, weight, bias))
    assert out.shape == (N, C, H // 2, W // 2), out.shape
    assert jnp.allclose(out, ref, atol=1e-5, rtol=1e-5), \
        float(jnp.max(jnp.abs(out - ref)))

    # bf16-operand path (recommended on v5e/v6e/v7x; f32 accumulation).
    out_bf16 = jax.block_until_ready(
        downsampling_forward(x, weight, bias, compute_dtype=jnp.bfloat16))
    assert out_bf16.shape == (N, C, H // 2, W // 2), out_bf16.shape
    assert jnp.allclose(out_bf16, ref, atol=5e-2, rtol=5e-2), \
        float(jnp.max(jnp.abs(out_bf16 - ref)))

    print("KERNEL_OK")
</pallas_src>

<mosaic_0001>
module attributes {stable_mosaic.version = 11 : i64} {
  func.func @kernel(%arg0: i32, %arg1: i32, %arg2: memref<1x1x16x90xf32, #tpu.memory_space<vmem>>, %arg3: memref<4x36xf32, #tpu.memory_space<vmem>>, %arg4: memref<4x1xf32, #tpu.memory_space<vmem>>, %arg5: memref<1x1x4x72xf32, #tpu.memory_space<vmem>>, %arg6: memref<36x72xf32, #tpu.memory_space<vmem>>) attributes {dimension_semantics = [#tpu.dimension_semantics<parallel>, #tpu.dimension_semantics<parallel>], iteration_bounds = array<i64: 2, 1>, scalar_prefetch = 0 : i64, scratch_operands = 1 : i64, tpu.core_type = #tpu.core_type<tc>, window_params = [{transform_indices = @transform_0, window_bounds = array<i64: 1, 1, 16, 90>}, {pipeline_mode = #tpu.pipeline_mode<synchronous>, transform_indices = @transform_1, window_bounds = array<i64: 4, 36>}, {pipeline_mode = #tpu.pipeline_mode<synchronous>, transform_indices = @transform_2, window_bounds = array<i64: 4, 1>}, {transform_indices = @transform_3, window_bounds = array<i64: 1, 1, 4, 72>}]} {
    %c0 = arith.constant 0 : index
    %c0_0 = arith.constant 0 : index
    %c0_1 = arith.constant 0 : index
    %c0_2 = arith.constant 0 : index
    %0 = vector.load %arg2[%c0, %c0_0, %c0_1, %c0_2] : memref<1x1x16x90xf32, #tpu.memory_space<vmem>>, vector<1x1x4x72xf32>
    %1 = vector.shape_cast %0 : vector<1x1x4x72xf32> to vector<4x72xf32>
    %c0_3 = arith.constant 0 : index
    %c0_4 = arith.constant 0 : index
    %2 = vector.load %arg6[%c0_3, %c0_4] : memref<36x72xf32, #tpu.memory_space<vmem>>, vector<4x72xf32>
    tpu.vector_store %arg6[%c0_3, %c0_4], %1 {strides = array<i32>} : memref<36x72xf32, #tpu.memory_space<vmem>>, vector<4x72xf32>,
    %c0_5 = arith.constant 0 : index
    %c0_6 = arith.constant 0 : index
    %c4 = arith.constant 4 : index
    %c0_7 = arith.constant 0 : index
    %3 = vector.load %arg2[%c0_5, %c0_6, %c4, %c0_7] : memref<1x1x16x90xf32, #tpu.memory_space<vmem>>, vector<1x1x4x72xf32>
    %4 = vector.shape_cast %3 : vector<1x1x4x72xf32> to vector<4x72xf32>
    %c4_8 = arith.constant 4 : index
    %c0_9 = arith.constant 0 : index
    %5 = vector.load %arg6[%c4_8, %c0_9] : memref<36x72xf32, #tpu.memory_space<vmem>>, vector<4x72xf32>
    tpu.vector_store %arg6[%c4_8, %c0_9], %4 {strides = array<i32>} : memref<36x72xf32, #tpu.memory_space<vmem>>, vector<4x72xf32>,
    %c0_10 = arith.constant 0 : index
    %c0_11 = arith.constant 0 : index
    %c0_12 = arith.constant 0 : index
    %c1 = arith.constant 1 : index
    %6 = vector.load %arg2[%c0_10, %c0_11, %c0_12, %c1] : memref<1x1x16x90xf32, #tpu.memory_space<vmem>>, vector<1x1x4x72xf32>
    %7 = vector.shape_cast %6 : vector<1x1x4x72xf32> to vector<4x72xf32>
    %c8 = arith.constant 8 : index
    %c0_13 = arith.constant 0 : index
    %8 = vector.load %arg6[%c8, %c0_13] : memref<36x72xf32, #tpu.memory_space<vmem>>, vector<4x72xf32>
    tpu.vector_store %arg6[%c8, %c0_13], %7 {strides = array<i32>} : memref<36x72xf32, #tpu.memory_space<vmem>>, vector<4x72xf32>,
    %c0_14 = arith.constant 0 : index
    %c0_15 = arith.constant 0 : index
    %c8_16 = arith.constant 8 : index
    %c0_17 = arith.constant 0 : index
    %9 = vector.load %arg2[%c0_14, %c0_15, %c8_16, %c0_17] : memref<1x1x16x90xf32, #tpu.memory_space<vmem>>, vector<1x1x4x72xf32>
    %10 = vector.shape_cast %9 : vector<1x1x4x72xf32> to vector<4x72xf32>
    %c12 = arith.constant 12 : index
    %c0_18 = arith.constant 0 : index
    %11 = vector.load %arg6[%c12, %c0_18] : memref<36x72xf32, #tpu.memory_space<vmem>>, vector<4x72xf32>
    tpu.vector_store %arg6[%c12, %c0_18], %10 {strides = array<i32>} : memref<36x72xf32, #tpu.memory_space<vmem>>, vector<4x72xf32>,
    %c0_19 = arith.constant 0 : index
    %c0_20 = arith.constant 0 : index
    %c12_21 = arith.constant 12 : index
    %c0_22 = arith.constant 0 : index
    %12 = vector.load %arg2[%c0_19, %c0_20, %c12_21, %c0_22] : memref<1x1x16x90xf32, #tpu.memory_space<vmem>>, vector<1x1x4x72xf32>
    %13 = vector.shape_cast %12 : vector<1x1x4x72xf32> to vector<4x72xf32>
    %c16 = arith.constant 16 : index
    %c0_23 = arith.constant 0 : index
    %14 = vector.load %arg6[%c16, %c0_23] : memref<36x72xf32, #tpu.memory_space<vmem>>, vector<4x72xf32>
    tpu.vector_store %arg6[%c16, %c0_23], %13 {strides = array<i32>} : memref<36x72xf32, #tpu.memory_space<vmem>>, vector<4x72xf32>,
    %c0_24 = arith.constant 0 : index
    %c0_25 = arith.constant 0 : index
    %c8_26 = arith.constant 8 : index
    %c1_27 = arith.constant 1 : index
    %15 = vector.load %arg2[%c0_24, %c0_25, %c8_26, %c1_27] : memref<1x1x16x90xf32, #tpu.memory_space<vmem>>, vector<1x1x4x72xf32>
    %16 = vector.shape_cast %15 : vector<1x1x4x72xf32> to vector<4x72xf32>
    %c20 = arith.constant 20 : index
    %c0_28 = arith.constant 0 : index
    %17 = vector.load %arg6[%c20, %c0_28] : memref<36x72xf32, #tpu.memory_space<vmem>>, vector<4x72xf32>
    tpu.vector_store %arg6[%c20, %c0_28], %16 {strides = array<i32>} : memref<36x72xf32, #tpu.memory_space<vmem>>, vector<4x72xf32>,
    %c0_29 = arith.constant 0 : index
    %c0_30 = arith.constant 0 : index
    %c0_31 = arith.constant 0 : index
    %c9 = arith.constant 9 : index
    %18 = vector.load %arg2[%c0_29, %c0_30, %c0_31, %c9] : memref<1x1x16x90xf32, #tpu.memory_space<vmem>>, vector<1x1x4x72xf32>
    %19 = vector.shape_cast %18 : vector<1x1x4x72xf32> to vector<4x72xf32>
    %c24 = arith.constant 24 : index
    %c0_32 = arith.constant 0 : index
    %20 = vector.load %arg6[%c24, %c0_32] : memref<36x72xf32, #tpu.memory_space<vmem>>, vector<4x72xf32>
    tpu.vector_store %arg6[%c24, %c0_32], %19 {strides = array<i32>} : memref<36x72xf32, #tpu.memory_space<vmem>>, vector<4x72xf32>,
    %c0_33 = arith.constant 0 : index
    %c0_34 = arith.constant 0 : index
    %c4_35 = arith.constant 4 : index
    %c9_36 = arith.constant 9 : index
    %21 = vector.load %arg2[%c0_33, %c0_34, %c4_35, %c9_36] : memref<1x1x16x90xf32, #tpu.memory_space<vmem>>, vector<1x1x4x72xf32>
    %22 = vector.shape_cast %21 : vector<1x1x4x72xf32> to vector<4x72xf32>
    %c28 = arith.constant 28 : index
    %c0_37 = arith.constant 0 : index
    %23 = vector.load %arg6[%c28, %c0_37] : memref<36x72xf32, #tpu.memory_space<vmem>>, vector<4x72xf32>
    tpu.vector_store %arg6[%c28, %c0_37], %22 {strides = array<i32>} : memref<36x72xf32, #tpu.memory_space<vmem>>, vector<4x72xf32>,
    %c0_38 = arith.constant 0 : index
    %c0_39 = arith.constant 0 : index
    %c0_40 = arith.constant 0 : index
    %c10 = arith.constant 10 : index
    %24 = vector.load %arg2[%c0_38, %c0_39, %c0_40, %c10] : memref<1x1x16x90xf32, #tpu.memory_space<vmem>>, vector<1x1x4x72xf32>
    %25 = vector.shape_cast %24 : vector<1x1x4x72xf32> to vector<4x72xf32>
    %c32 = arith.constant 32 : index
    %c0_41 = arith.constant 0 : index
    %26 = vector.load %arg6[%c32, %c0_41] : memref<36x72xf32, #tpu.memory_space<vmem>>, vector<4x72xf32>
    tpu.vector_store %arg6[%c32, %c0_41], %25 {strides = array<i32>} : memref<36x72xf32, #tpu.memory_space<vmem>>, vector<4x72xf32>,
    %c0_42 = arith.constant 0 : index
    %c0_43 = arith.constant 0 : index
    %27 = vector.load %arg3[%c0_42, %c0_43] : memref<4x36xf32, #tpu.memory_space<vmem>>, vector<4x36xf32>
    %c0_44 = arith.constant 0 : index
    %c0_45 = arith.constant 0 : index
    %28 = vector.load %arg6[%c0_44, %c0_45] : memref<36x72xf32, #tpu.memory_space<vmem>>, vector<36x72xf32>
    %cst = arith.constant dense<0.000000e+00> : vector<4x72xf32>
    %29 = tpu.matmul %27, %28, %cst {dimension_numbers = #tpu.dot_dimension_numbers<[1], [0], [0], [1], [0, 0, 1, 1], [], []>} : vector<4x36xf32>, vector<36x72xf32>, vector<4x72xf32> -> vector<4x72xf32>
    %c0_46 = arith.constant 0 : index
    %c0_47 = arith.constant 0 : index
    %30 = vector.load %arg4[%c0_46, %c0_47] : memref<4x1xf32, #tpu.memory_space<vmem>>, vector<4x1xf32>
    %31 = vector.broadcast %30 : vector<4x1xf32> to vector<4x72xf32>
    %32 = arith.addf %29, %31 : vector<4x72xf32>
    %cst_48 = arith.constant 0.000000e+00 : f32
    %33 = vector.broadcast %cst_48 : f32 to vector<4x72xf32>
    %34 = arith.maximumf %32, %33 : vector<4x72xf32>
    %c0_49 = arith.constant 0 : index
    %c0_50 = arith.constant 0 : index
    %c0_51 = arith.constant 0 : index
    %c0_52 = arith.constant 0 : index
    %35 = vector.load %arg5[%c0_49, %c0_50, %c0_51, %c0_52] : memref<1x1x4x72xf32, #tpu.memory_space<vmem>>, vector<1x1x4x72xf32>
    %36 = vector.shape_cast %35 : vector<1x1x4x72xf32> to vector<4x72xf32>
    %37 = vector.shape_cast %34 : vector<4x72xf32> to vector<1x1x4x72xf32>
    tpu.vector_store %arg5[%c0_49, %c0_50, %c0_51, %c0_52], %37 {strides = array<i32>} : memref<1x1x4x72xf32, #tpu.memory_space<vmem>>, vector<1x1x4x72xf32>,
    return
  }
  func.func @transform_0(%arg0: i32, %arg1: i32) -> (i32, i32, i32, i32) {
    %c0_i32 = arith.constant 0 : i32
    %c0_i32_0 = arith.constant 0 : i32
    %c0_i32_1 = arith.constant 0 : i32
    return %arg0, %arg1, %c0_i32, %c0_i32_0 : i32, i32, i32, i32
  }
  func.func @transform_1(%arg0: i32, %arg1: i32) -> (i32, i32) {
    %c0_i32 = arith.constant 0 : i32
    %c0_i32_0 = arith.constant 0 : i32
    %c0_i32_1 = arith.constant 0 : i32
    return %c0_i32, %c0_i32_0 : i32, i32
  }
  func.func @transform_2(%arg0: i32, %arg1: i32) -> (i32, i32) {
    %c0_i32 = arith.constant 0 : i32
    %c0_i32_0 = arith.constant 0 : i32
    %c0_i32_1 = arith.constant 0 : i32
    return %c0_i32, %c0_i32_0 : i32, i32
  }
  func.func @transform_3(%arg0: i32, %arg1: i32) -> (i32, i32, i32, i32) {
    %c0_i32 = arith.constant 0 : i32
    %c0_i32_0 = arith.constant 0 : i32
    %c0_i32_1 = arith.constant 0 : i32
    return %arg0, %arg1, %c0_i32, %c0_i32_0 : i32, i32, i32, i32
  }
}

</mosaic_0001>

<bundles_post_ra>
// kernel: downsampling_forward.1
= control target key start
LH: loop header
LB: loop body
LE: loop exit
PB: predicated region body
PF: predicated region fallthrough
CT: control target
= control target key end

     0   :  { %s536_s12 = smov 0   ;;  %s538_s13 = smov 0   ;;  %s589_s0 = inlined_call_operand.vmem [shape: f32[2,1,16,90], index: 0, kind: input, shape index: {}]   ;;  %s590_s1 = inlined_call_operand.vmem [shape: f32[4,36], index: 1, kind: input, shape index: {}]   ;;  %s591_s2 = inlined_call_operand.vmem [shape: f32[4,1], index: 2, kind: input, shape index: {}]   ;;  %s592_s3 = inlined_call_operand.vmem [shape: f32[2,1,4,72], index: 3, kind: output, shape index: {}]  }
   0x1   :  { %s540_s14 = smov 0  }
   0x2 LB: > { %s25_s15 = sadd.s32 1, %s503_s13  ;;  %p418_p0 = scmp.ge.s32.totalorder %s507_s14, 1  ;;  %s507_s14 = sphi %s540_s14, %s13_s14   ;;  %s503_s13 = sphi %s538_s13, %s594_s13   ;;  %s499_s12 = sphi %s536_s12, %s593_s12  }
   0x3   : > { %p27_p1 = scmp.ge.s32.totalorder %s25_s15, 2  ;;  %p157_p2 = scmp.lt.s32.totalorder %s507_s14, 3 }
   0x5   : > { %s596_s15 = smov (%p27_p1, %s25_s15), 0  ;;  %p158_p3 = pnand %p418_p0, %p157_p2 }
   0x6   : > { %p187_p4 = scmp.lt.s32.totalorder (!%p158_p3), %s499_s12, 1  ;;  %v509_v0 = vmov (!%p158_p3), 0.0|0.0   ;;  %vm204_vm0 = vcmask (!%p158_p3), 584704   ;;  %s510_s20 = smov (!%p158_p3), 119   ;;  %vm512_vm1 = vmmov (!%p158_p3), 0   ;;  %v513_v10 = vmov (!%p158_p3), 0.0  }
   0x7   : > { %161 = sbr.rel (%p158_p3) target bundleno = 370 (0x172), region = 32  ;;  %446 = vmatprep.subr.bf16.mxu0 (!%p158_p3), %v509_v0  ;;  %s511_s21 = smov (!%p158_p3), 127   ;;  %443 = vmatprep.mubr.msk.f32.mxu0 (!%p158_p3), %vm512_vm1, %v513_v10  ;;  %v248_v11 = vld [vmem:[%s591_s2] sm:$0xf] (!%p158_p3)  ;;  %v514_v12 = vmov (!%p158_p3), 0   ;;  %vm258_vm2 = vcmask (!%p158_p3), 1043456  }
   0x8   : > { %483 = vset.pattern.permute.xlu1 (!%p158_p3), %v514_v12  ;;  %484 = vset.pattern.permute.xlu0 (!%p158_p3), %v514_v12  ;;  %s515_s24 = smov (!%p158_p3), 118   ;;  %v242_v25 = vld [vmem:[%s590_s1] sm:$0xf] (!%p158_p3)  ;;  %vm254_vm3 = vcmask (!%p158_p3), 293888  }
   0xe   : > { %s598_s12 = smov (!%p187_p4, %s499_s12), 1 }
   0xf   : > { %s426_s16 = sshll.u32 %s598_s12, 4  ;;  %s421_s27 = sshll.u32 %s598_s12, 2 }
  0x10   : > { %s195_s19 = scalar_lea.vmem %s589_s0, %s426_s16  ;;  %s202_s30 = scalar_lea.vmem %s592_s3, %s421_s27 }
  0x11   : > { %v224_v1 = vld [vmem:[%s195_s19] sm:$0xf]  ;;  %v230_v3 = vld [vmem:[%s195_s19 + $0x4] sm:$0xf]  ;;  %v218_v4 = vld [vmem:[%s195_s19 + $0x8] sm:$0xf] }
  0x12   : > { %v208_v2 = vld [vmem:[%s195_s19] sm:$0xf]  ;;  %226 = vrot.lane.b32.xlu1 %v224_v1, %s510_s20  ;;  %v206_v6 = vld [vmem:[%s195_s19 + $0x4] sm:$0xf]  ;;  %v214_v7 = vld [vmem:[%s195_s19 + $0x8] sm:$0xf] }
  0x13   : > { %210 = vrot.lane.b32.xlu0 %v208_v2, %s511_s21  ;;  %v203_v5 = vld [vmem:[%s195_s19] sm:$0xf]  ;;  %207 = vst.msk [vmem:[#allocation2 + $0x4] sm:$0xf] %vm204_vm0, %v206_v6  ;;  %215 = vst.msk [vmem:[#allocation2 + $0xc] sm:$0xf] %vm204_vm0, %v214_v7 }
  0x14   : > { %205 = vst.msk [vmem:[#allocation2] sm:$0xf] %vm204_vm0, %v203_v5  ;;  %v216_v8 = vld [vmem:[%s195_s19 + $0xc] sm:$0xf]  ;;  %v236_v9 = vld [vmem:[%s195_s19] sm:$0xf] }
  0x15   : > { %217 = vst.msk [vmem:[#allocation2 + $0x10] sm:$0xf] %vm204_vm0, %v216_v8 }
  0x16   : > { %232 = vrot.lane.b32.xlu1 %v230_v3, %s510_s20 }
  0x17   : > { %220 = vrot.lane.b32.xlu0 %v218_v4, %s511_s21 }
  0x1a   : > { %251 = vperm.xlu1 %483, %v248_v11  }
  0x1b   : > { %238 = vrot.lane.b32.xlu0 %v236_v9, %s515_s24  ;;  %v243_v17 = vld [vmem:[#allocation2] sm:$0xff] }
  0x84   : > { %v227_v13 = vpop.permute.xlu1 %226 }
  0x85   : > { %v211_v14 = vpop.permute.xlu0 %210  ;;  %229 = vst.msk [vmem:[#allocation2 + $0x18] sm:$0xf] %vm204_vm0, %v227_v13 }
  0x86   : > { %213 = vst.msk [vmem:[#allocation2 + $0x8] sm:$0xf] %vm204_vm0, %v211_v14 }
  0x88   : > { %v233_v15 = vpop.permute.xlu1 %232 }
  0x89   : > { %v221_v16 = vpop.permute.xlu0 %220  ;;  %235 = vst.msk [vmem:[#allocation2 + $0x1c] sm:$0xf] %vm204_vm0, %v233_v15 }
  0x8a   : > { %223 = vst.msk [vmem:[#allocation2 + $0x14] sm:$0xf] %vm204_vm0, %v221_v16 }
  0x8d   : > { %v239_v18 = vpop.permute.xlu0 %238  ;;  %v244_v19 = vld [vmem:[#allocation2 + $0x8] sm:$0xff] }
  0x8e   : > { %241 = vst.msk [vmem:[#allocation2 + $0x20] sm:$0xf] %vm204_vm0, %v239_v18  ;;  %v447_v20 = vpack.c.bf16 %v244_v19, %v243_v17 }
  0x90   : > { %448 = vmatpush3.bf16.msra.mxu0 %v447_v20  ;;  %v246_v22 = vld [vmem:[#allocation2 + $0x18] sm:$0xff] }
  0x91   : > { %449 = vmatprep.subr.bf16.mxu0 %v509_v0  ;;  %v245_v21 = vld [vmem:[#allocation2 + $0x10] sm:$0xff] }
  0x92   : > { %v450_v23 = vpack.c.bf16 %v246_v22, %v245_v21 }
  0x94   : > { %451 = vmatpush3.bf16.msra.mxu0 %v450_v23 }
  0x95   : > { %441 = vmatprep.subr.mxu0 %v513_v10  ;;  %v247_v24 = vld [vmem:[#allocation2 + $0x20] sm:$0xf] }
  0x98   : > { %442 = vmatpush3.msk.msra.mxu0 %vm258_vm2, %v247_v24 }
  0x99   : > { %444 = vmatmul.mubr.msk.f32.vlgmr.msra.gmra.mrb[0].mxu0 %vm254_vm3, %v242_v25  ;;  %v252_v26 = vpop.permute.xlu1 %251 }
 0x16c   : > { %v328_v27 = vpop.f32.mrb[0].mxu0 }
 0x16d   : > { %v329_v28 = vadd.f32 %v328_v27, %v252_v26  ;;  %v445_v29 = vpop.f32.mrb[1].mxu0 }
 0x16f   : > { %v332_v30 = vmax.f32 %v329_v28, 0.0 }
 0x171   : > { %333 = vst.msk [vmem:[%s202_s30] sm:$0xf] %vm204_vm0, %v332_v30 }
 0x172 PF: > { %s13_s14 = sadd.s32 1, %s507_s14   ;;  %s593_s12 = smov %s503_s13 }
 0x173   : > { %p10_p5 = scmp.ge.s32.totalorder %s13_s14, 4   ;;  %s594_s13 = smov %s596_s15 }
 0x175   :  { %12 = sbr.rel (!%p10_p5) target bundleno = 2 (0x2), region = 62 }

</bundles_post_ra>
